<compile_context>
chip_gen: v5e
topology: v5e:2x2
jax: 0.10.0
libtpu: 0.0.40
codegen_flags: <defaults>
</compile_context>

<pallas_src>
import functools

import jax
import jax.numpy as jnp
from jax.experimental import pallas as pl
from jax.experimental.pallas import tpu as pltpu

_COMPUTE_DTYPE = jnp.bfloat16
_LANE = 128
_VMEM_LIMIT_BYTES = 32 * 1024 * 1024   # safe on v5e/v6e/v7x


# ---------------------------------------------------------------------------
# Tiling plan helpers (pure Python, shapes are static under jit).
# ---------------------------------------------------------------------------
def _round_up(x, m):
    return (x + m - 1) // m * m


def _cdiv(a, b):
    return (a + b - 1) // b


def _choose_tile(dim, align, cap):
    """Largest tile <= cap (multiple of `align`) minimizing padding of `dim`."""
    aligned = _round_up(dim, align)
    if aligned <= cap:
        return aligned
    best_tile, best_pad = cap, None
    nb0 = _cdiv(aligned, cap)
    for nb in range(nb0, nb0 + 3):          # small search fixes "just above cap"
        tile = _round_up(_cdiv(aligned, nb), align)
        if tile > cap:
            continue
        padded = _round_up(dim, tile)
        if best_pad is None or padded < best_pad:
            best_tile, best_pad = tile, padded
    return best_tile


def _plan_nk(out_features, in_features):
    tn = _choose_tile(out_features, _LANE, 512)
    tk = _choose_tile(in_features, _LANE, 2048)
    n_pad = _round_up(out_features, tn)
    k_pad = _round_up(in_features, tk)
    return tn, n_pad, tk, k_pad


# ---------------------------------------------------------------------------
# Kernels.
# ---------------------------------------------------------------------------
def _linear_kernel_acc(x_ref, w_ref, o_ref, acc_ref):
    # x_ref: (tm, tk)  w_ref: (tk, tn) (weight stored transposed, lane-dense N)
    # o_ref: (tm, tn)  acc_ref: fp32 scratch resident across the K grid axis.
    @pl.when(pl.program_id(2) == 0)
    def _():
        acc_ref[...] = jnp.zeros_like(acc_ref)

    a = x_ref[...].astype(w_ref.dtype)       # VPU cast (no-op if already bf16)
    acc_ref[...] += jnp.dot(a, w_ref[...], preferred_element_type=jnp.float32)

    @pl.when(pl.program_id(2) == pl.num_programs(2) - 1)
    def _():
        o_ref[...] = acc_ref[...].astype(o_ref.dtype)


def _linear_kernel_noacc(x_ref, w_ref, o_ref):
    # Single K block: no accumulator scratch, output written exactly once.
    a = x_ref[...].astype(w_ref.dtype)
    o_ref[...] = jnp.dot(
        a, w_ref[...], preferred_element_type=jnp.float32
    ).astype(o_ref.dtype)


# ---------------------------------------------------------------------------
# Wrapper.
# ---------------------------------------------------------------------------
def prepare_weight(weight, compute_dtype=_COMPUTE_DTYPE):
    """One-time weight prep: (out,in) -> transposed (K,N), bf16, zero-padded."""
    out_features, in_features = weight.shape
    _, n_pad, _, k_pad = _plan_nk(out_features, in_features)
    w_t = jnp.asarray(weight).T.astype(compute_dtype)        # (K, N)
    if (k_pad, n_pad) != (in_features, out_features):
        w_t = jnp.pad(w_t, ((0, k_pad - in_features), (0, n_pad - out_features)))
    return w_t


@functools.partial(jax.jit, static_argnames=("out_features",))
def moe_expert_forward(x, w_prepared, out_features):
    """y = x @ weight.T with weight pre-prepared by prepare_weight().

    x:          (..., in_features)
    w_prepared: (k_pad, n_pad) bf16 — transposed/cast/padded PyTorch weight
    returns     (..., out_features) in x.dtype
    """
    k_pad, n_pad = w_prepared.shape
    in_features = x.shape[-1]
    lead = x.shape[:-1]
    m = 1
    for d in lead:
        m *= d
    x2d = x.reshape(m, in_features)

    tn, n_pad_p, tk, k_pad_p = _plan_nk(out_features, in_features)
    assert (k_pad, n_pad) == (k_pad_p, n_pad_p), (
        "weight must be prepared with prepare_weight() for these feature dims")

    m_align = 128 if m >= 128 else 16        # fill v5e's 4x128 MXU rows when possible
    tm = _choose_tile(m, m_align, 512)
    m_pad = _round_up(m, tm)
    m_blocks = m_pad // tm
    n_blocks = n_pad // tn
    k_blocks = k_pad // tk

    # v7x: guarantee >=2 blocks on a "parallel" axis so both TensorCores work.
    if m_blocks == 1 and n_blocks == 1 and tn % 256 == 0:
        tn //= 2
        n_blocks = 2

    compute_dtype = w_prepared.dtype
    needs_pad = (m_pad != m) or (k_pad != in_features)
    if needs_pad:
        x_in = x2d if x2d.dtype == compute_dtype else x2d.astype(compute_dtype)
        x_in = jnp.pad(x_in, ((0, m_pad - m), (0, k_pad - in_features)))
    elif x2d.dtype != compute_dtype and n_blocks <= 2:
        # Skip the separate XLA cast pass; cast on the VPU inside the kernel.
        x_in = x2d
    else:
        x_in = x2d if x2d.dtype == compute_dtype else x2d.astype(compute_dtype)

    out_dtype = x.dtype
    cost = pl.CostEstimate(
        flops=2 * m_pad * n_pad * k_pad,
        transcendentals=0,
        bytes_accessed=(m_pad * k_pad * x_in.dtype.itemsize
                        + k_pad * n_pad * w_prepared.dtype.itemsize
                        + m_pad * n_pad * jnp.dtype(out_dtype).itemsize),
    )

    if k_blocks == 1:
        kernel = _linear_kernel_noacc
        grid_spec = pltpu.PrefetchScalarGridSpec(
            num_scalar_prefetch=0,
            grid=(m_blocks, n_blocks),
            in_specs=[
                pl.BlockSpec((tm, k_pad), lambda i, j: (i, 0)),     # x strip
                pl.BlockSpec((k_pad, tn), lambda i, j: (0, j)),     # weight (K,N)
            ],
            out_specs=pl.BlockSpec((tm, tn), lambda i, j: (i, j)),
        )
        dim_sem = ("parallel", "parallel")
    else:
        kernel = _linear_kernel_acc
        grid_spec = pltpu.PrefetchScalarGridSpec(
            num_scalar_prefetch=0,
            grid=(m_blocks, n_blocks, k_blocks),
            in_specs=[
                pl.BlockSpec((tm, tk), lambda i, j, k: (i, k)),     # x tile
                pl.BlockSpec((tk, tn), lambda i, j, k: (k, j)),     # weight (K,N)
            ],
            out_specs=pl.BlockSpec((tm, tn), lambda i, j, k: (i, j)),
            scratch_shapes=[pltpu.VMEM((tm, tn), jnp.float32)],
        )
        dim_sem = ("parallel", "parallel", "arbitrary")

    y_pad = pl.pallas_call(
        kernel,
        out_shape=jax.ShapeDtypeStruct((m_pad, n_pad), out_dtype),
        grid_spec=grid_spec,
        compiler_params=pltpu.CompilerParams(
            dimension_semantics=dim_sem,
            vmem_limit_bytes=_VMEM_LIMIT_BYTES,
        ),
        cost_estimate=cost,
    )(x_in, w_prepared)

    y2d = y_pad[:m, :out_features]
    return y2d.reshape(*lead, out_features)


class MOEExpert:
    """JAX/Pallas equivalent of the PyTorch MOEExpert module (Linear, no bias)."""

    def __init__(self, in_features, out_features, key,
                 compute_dtype=_COMPUTE_DTYPE):
        self.in_features = in_features
        self.out_features = out_features
        # Deterministic init mimicking nn.Linear's kaiming-uniform range.
        bound = 1.0 / (in_features ** 0.5)
        self.weight = jax.random.uniform(
            key, (out_features, in_features), dtype=jnp.float32,
            minval=-bound, maxval=bound,
        )
        # Hoisted one-time prep: transpose to (K,N), cast to bf16, zero-pad.
        self.w_kernel = prepare_weight(self.weight, compute_dtype)

    def __call__(self, x):
        return moe_expert_forward(x, self.w_kernel, self.out_features)


if __name__ == "__main__":
    key = jax.random.PRNGKey(0)
    k_w, k_x, k_w2, k_x2, k_w3, k_x3 = jax.random.split(key, 6)

    # --- small shape: exercises the M/N/K padding path + no-acc kernel -------
    in_features, out_features = 32, 64
    batch, seq = 2, 8
    expert = MOEExpert(in_features, out_features, k_w)
    x = jax.random.normal(k_x, (batch, seq, in_features), dtype=jnp.float32)
    y = jax.block_until_ready(expert(x))
    assert y.shape == (batch, seq, out_features)
    assert y.dtype == x.dtype

    xb = x.astype(jnp.bfloat16).astype(jnp.float32)
    wb = expert.weight.astype(jnp.bfloat16).astype(jnp.float32)
    y_ref = xb @ wb.T
    assert jnp.allclose(y, y_ref, atol=1e-2, rtol=1e-2)
    assert jnp.allclose(y, x @ expert.weight.T, atol=5e-2, rtol=5e-2)

    # --- medium shape: single K block, v7x N-split, in-kernel f32->bf16 cast -
    in2, out2 = 1024, 512
    expert2 = MOEExpert(in2, out2, k_w2)
    x2 = jax.random.normal(k_x2, (4, 64, in2), dtype=jnp.float32)
    y2 = jax.block_until_ready(expert2(x2))
    assert y2.shape == (4, 64, out2)
    x2b = x2.astype(jnp.bfloat16).astype(jnp.float32)
    w2b = expert2.weight.astype(jnp.bfloat16).astype(jnp.float32)
    assert jnp.allclose(y2, x2b @ w2b.T, atol=1e-2, rtol=1e-2)

    # --- large-K shape: exercises the multi-K-block fp32 accumulator path ----
    in3, out3 = 4096, 512
    expert3 = MOEExpert(in3, out3, k_w3)
    x3 = jax.random.normal(k_x3, (2, 128, in3), dtype=jnp.float32)
    y3 = jax.block_until_ready(expert3(x3))
    assert y3.shape == (2, 128, out3)
    x3b = x3.astype(jnp.bfloat16).astype(jnp.float32)
    w3b = expert3.weight.astype(jnp.bfloat16).astype(jnp.float32)
    assert jnp.allclose(y3, x3b @ w3b.T, atol=2e-2, rtol=2e-2)

    print("KERNEL_OK")
</pallas_src>

<mosaic_0001>
module attributes {stable_mosaic.version = 11 : i64} {
  func.func @_linear_kernel_noacc(%arg0: i32, %arg1: i32, %arg2: memref<16x128xbf16, #tpu.memory_space<vmem>>, %arg3: memref<128x128xbf16, #tpu.memory_space<vmem>>, %arg4: memref<16x128xf32, #tpu.memory_space<vmem>>) attributes {dimension_semantics = [#tpu.dimension_semantics<parallel>, #tpu.dimension_semantics<parallel>], iteration_bounds = array<i64: 1, 1>, scalar_prefetch = 0 : i64, scratch_operands = 0 : i64, tpu.core_type = #tpu.core_type<tc>, window_params = [{transform_indices = @transform_0, window_bounds = array<i64: 16, 128>}, {transform_indices = @transform_1, window_bounds = array<i64: 128, 128>}, {transform_indices = @transform_2, window_bounds = array<i64: 16, 128>}]} {
    %c0 = arith.constant 0 : index
    %c0_0 = arith.constant 0 : index
    %0 = vector.load %arg2[%c0, %c0_0] : memref<16x128xbf16, #tpu.memory_space<vmem>>, vector<16x128xbf16>
    %c0_1 = arith.constant 0 : index
    %c0_2 = arith.constant 0 : index
    %1 = vector.load %arg3[%c0_1, %c0_2] : memref<128x128xbf16, #tpu.memory_space<vmem>>, vector<128x128xbf16>
    %cst = arith.constant dense<0.000000e+00> : vector<16x128xf32>
    %2 = tpu.matmul %0, %1, %cst {dimension_numbers = #tpu.dot_dimension_numbers<[1], [0], [0], [1], [0, 0, 1, 1], [], []>} : vector<16x128xbf16>, vector<128x128xbf16>, vector<16x128xf32> -> vector<16x128xf32>
    %c0_3 = arith.constant 0 : index
    %c0_4 = arith.constant 0 : index
    %3 = vector.load %arg4[%c0_3, %c0_4] : memref<16x128xf32, #tpu.memory_space<vmem>>, vector<16x128xf32>
    tpu.vector_store %arg4[%c0_3, %c0_4], %2 {strides = array<i32>} : memref<16x128xf32, #tpu.memory_space<vmem>>, vector<16x128xf32>,
    return
  }
  func.func @transform_0(%arg0: i32, %arg1: i32) -> (i32, i32) {
    %c0_i32 = arith.constant 0 : i32
    %c0_i32_0 = arith.constant 0 : i32
    return %arg0, %c0_i32 : i32, i32
  }
  func.func @transform_1(%arg0: i32, %arg1: i32) -> (i32, i32) {
    %c0_i32 = arith.constant 0 : i32
    %c0_i32_0 = arith.constant 0 : i32
    return %c0_i32, %arg1 : i32, i32
  }
  func.func @transform_2(%arg0: i32, %arg1: i32) -> (i32, i32) {
    %c0_i32 = arith.constant 0 : i32
    return %arg0, %arg1 : i32, i32
  }
}

</mosaic_0001>

<bundles_post_ra>
// kernel: moe_expert_forward.1
= control target key start
LH: loop header
LB: loop body
LE: loop exit
PB: predicated region body
PF: predicated region fallthrough
CT: control target
= control target key end

     0   :  { %7 = vsyncpa [#allocation3], 0  ;;  %s194_s12 = smov [#allocation2]   ;;  %s195_s14 = smov 64   ;;  %s224_s0 = inlined_call_operand.vmem [shape: bf16[16,128], index: 0, kind: input, shape index: {}]   ;;  %s225_s1 = inlined_call_operand.hbm [shape: bf16[128,128], index: 1, kind: input, shape index: {}]   ;;  %s226_s2 = inlined_call_operand.vmem [shape: f32[16,128], index: 2, kind: output, shape index: {}]  }
   0x1   :  { %s14_s11 = sshll.u32 %s225_s1, 4  ;;  %s16_s13 = sshll.u32 %s194_s12, 4  ;;  %s15_s11 = int_to_ptr.hbm [resolvable:$true] %s14_s11  ;;  %s17_s13 = int_to_ptr.vmem [resolvable:$true] %s16_s13 }
   0x2   :  { %s196_s15 = smov 4  }
   0x3   :  { %22 = dma.hbm_to_vmem [thread:$0]  %s15_s11, 1024, %s17_s13, [#allocation3], %s195_s14, %s195_s14, %s196_s15  }
   0x4   :  { %192 = dma.done.wait [#allocation3], 1024  }
   0x5   :  { %193 = vsyncadd [#allocation3], 4294966272  ;;  %v164_v0 = vld [vmem:[#allocation2 + $0x38] sm:$0xff]  ;;  %v163_v1 = vld [vmem:[#allocation2 + $0x30] sm:$0xff] }
   0x6   :  { %99 = vmatpush.bf16.msra.mxu0 %v164_v0  ;;  %v162_v2 = vld [vmem:[#allocation2 + $0x28] sm:$0xff]  ;;  %v161_v3 = vld [vmem:[#allocation2 + $0x20] sm:$0xff]  ;;  %v160_v4 = vld [vmem:[#allocation2 + $0x18] sm:$0xff] }
   0x7   :  { %v159_v5 = vld [vmem:[#allocation2 + $0x10] sm:$0xff]  ;;  %v158_v6 = vld [vmem:[#allocation2 + $0x8] sm:$0xff]  ;;  %v157_v7 = vld [vmem:[#allocation2] sm:$0xff] }
   0x8   :  { %v156_v8 = vld [vmem:[%s224_s0] sm:$0xff] }
   0xa   :  { %100 = vmatpush.bf16.msra.mxu0 %v163_v1 }
   0xe   :  { %101 = vmatpush.bf16.msra.mxu0 %v162_v2 }
  0x12   :  { %102 = vmatpush.bf16.msra.mxu0 %v161_v3 }
  0x16   :  { %103 = vmatpush.bf16.msra.mxu0 %v160_v4 }
  0x1a   :  { %104 = vmatpush.bf16.msra.mxu0 %v159_v5 }
  0x1e   :  { %105 = vmatpush.bf16.msra.mxu0 %v158_v6 }
  0x22   :  { %106 = vmatpush.bf16.msra.mxu0 %v157_v7 }
  0x25   :  { %107 = vmatmul.bf16.vlgmr.msra.gmra.mxu0 %v156_v8 }
  0xa2   :  { %v108_v9 = vpop.f32.mrf.mxu0 }
  0xa3   :  { %113 = vst [vmem:[%s226_s2] sm:$0xff] %v108_v9 }
  0xaa   :  { %v110_v10 = vpop.f32.mrf.mxu0 }
  0xab   :  { %114 = vst [vmem:[%s226_s2 + $0x8] sm:$0xff] %v110_v10 }
  0xac   :  { %119 = vsyncpa [#allocation3], 1 }

</bundles_post_ra>
